<compile_context>
chip_gen: v5e
topology: v5e:2x2
jax: 0.10.0
libtpu: 0.0.40
codegen_flags: <defaults>
</compile_context>

<pallas_src>
import jax
import jax.numpy as jnp
from jax.experimental import pallas as pl
from jax.experimental.pallas import tpu as pltpu


def _round_up(n: int, m: int) -> int:
    return ((n + m - 1) // m) * m


def _cdiv(a: int, b: int) -> int:
    return (a + b - 1) // b


def mlp_kernel(x_ref, w1_ref, b1_ref, w2_ref, b2_ref, w3_ref, b3_ref, o_ref):
    """One batch tile: three fused MXU matmuls + SiLU.

    Dot operands are bf16 (full-rate MXU); accumulation and bias/SiLU math are f32.
    sigmoid(h) is computed as 0.5*tanh(0.5*h)+0.5 (single EUP transcendental/elem).
    """
    x = x_ref[...].astype(jnp.bfloat16)                               # (TB, D)

    h1 = jnp.dot(x, w1_ref[...], preferred_element_type=jnp.float32) + b1_ref[...]
    h1 = h1 * (0.5 * jnp.tanh(0.5 * h1) + 0.5)                        # SiLU, f32

    h2 = jnp.dot(h1.astype(jnp.bfloat16), w2_ref[...],
                 preferred_element_type=jnp.float32) + b2_ref[...]
    h2 = h2 * (0.5 * jnp.tanh(0.5 * h2) + 0.5)                        # SiLU, f32

    out = jnp.dot(h2.astype(jnp.bfloat16), w3_ref[...],
                  preferred_element_type=jnp.float32) + b3_ref[...]
    o_ref[...] = out.astype(o_ref.dtype)                              # bf16 store (lane-dense)


def prepare_params(w1, b1, w2, b2, w3, b3, *, lane=128):
    """One-time padding of hidden/output dims to lane multiples + bf16 cast of weights.

    SiLU(0)=0 and zero weight rows/cols/biases keep padded lanes exactly zero through all
    three layers, so the padded class lanes can simply be sliced off after the kernel.
    Call this once (e.g. at init), not per forward call.
    """
    D, H1 = w1.shape
    H2, OUT = w2.shape[1], w3.shape[1]
    H1p, H2p, OUTp = (_round_up(n, lane) for n in (H1, H2, OUT))

    w1p = jnp.zeros((D, H1p), jnp.bfloat16).at[:, :H1].set(w1.astype(jnp.bfloat16))
    b1p = jnp.zeros((1, H1p), jnp.float32).at[:, :H1].set(b1)
    w2p = jnp.zeros((H1p, H2p), jnp.bfloat16).at[:H1, :H2].set(w2.astype(jnp.bfloat16))
    b2p = jnp.zeros((1, H2p), jnp.float32).at[:, :H2].set(b2)
    w3p = jnp.zeros((H2p, OUTp), jnp.bfloat16).at[:H2, :OUT].set(w3.astype(jnp.bfloat16))
    b3p = jnp.zeros((1, OUTp), jnp.float32).at[:, :OUT].set(b3)

    padded = tuple(jax.block_until_ready(a) for a in (w1p, b1p, w2p, b2p, w3p, b3p))
    return padded, OUT


def _choose_tb(B: int, tb_max: int) -> int:
    """Pick the batch tile: big tiles to amortize per-step overhead, but at least two
    grid steps when the batch allows it (so v7x's two TensorCores both get work)."""
    if B >= 2 * tb_max:
        return tb_max
    if B >= 256:
        return _round_up(_cdiv(B, 2), 128)
    return _round_up(max(B, 1), 8)


def mlp_classifier_forward(x, padded_params, out_classes, *, tb=2048):
    """x: [B, D] f32; padded_params from prepare_params(). Returns [B, out_classes] f32."""
    w1p, b1p, w2p, b2p, w3p, b3p = padded_params
    B, D = x.shape
    H1p, H2p, OUTp = w1p.shape[1], w2p.shape[1], w3p.shape[1]

    TB = _choose_tb(B, tb_max=tb)
    grid = (_cdiv(B, TB),)   # ragged last block: OOB loads are padded, OOB writes dropped

    def resident(shape):
        # Weights/biases: same block for every grid step -> stay resident in VMEM.
        return pl.BlockSpec(shape, lambda i: (0, 0))

    flops = 2 * B * (D * H1p + H1p * H2p + H2p * OUTp)
    transcendentals = B * (H1p + H2p)                     # one tanh per hidden element
    bytes_accessed = (
        x.size * 4
        + (w1p.size + w2p.size + w3p.size) * 2
        + (b1p.size + b2p.size + b3p.size) * 4
        + B * OUTp * 2                                     # bf16 writeback
    )

    out = pl.pallas_call(
        mlp_kernel,
        out_shape=jax.ShapeDtypeStruct((B, OUTp), jnp.bfloat16),
        grid=grid,
        in_specs=[
            pl.BlockSpec((TB, D), lambda i: (i, 0)),       # x: tiled over batch only
            resident((D, H1p)), resident((1, H1p)),
            resident((H1p, H2p)), resident((1, H2p)),
            resident((H2p, OUTp)), resident((1, OUTp)),
        ],
        out_specs=pl.BlockSpec((TB, OUTp), lambda i: (i, 0)),
        compiler_params=pltpu.CompilerParams(
            dimension_semantics=("parallel",),
        ),
        cost_estimate=pl.CostEstimate(
            flops=flops,
            transcendentals=transcendentals,
            bytes_accessed=bytes_accessed,
        ),
    )(x, w1p, b1p, w2p, b2p, w3p, b3p)

    # Slice padded class lanes off; return f32 logits.
    return out[:, :out_classes].astype(jnp.float32)


def init_params(key, d, l1_shape=100, l2_shape=100, out_classes=2):
    """Deterministic synthetic init (PyTorch-style uniform fan-in bound)."""
    ks = jax.random.split(key, 6)

    def linear(kw, kb, fan_in, fan_out):
        bound = 1.0 / jnp.sqrt(fan_in)
        # Stored already transposed relative to nn.Linear: (in, out)
        w = jax.random.uniform(kw, (fan_in, fan_out), jnp.float32, -bound, bound)
        b = jax.random.uniform(kb, (1, fan_out), jnp.float32, -bound, bound)
        return w, b

    w1, b1 = linear(ks[0], ks[1], d, l1_shape)
    w2, b2 = linear(ks[2], ks[3], l1_shape, l2_shape)
    w3, b3 = linear(ks[4], ks[5], l2_shape, out_classes)
    return w1, b1, w2, b2, w3, b3


def reference_forward(x, w1, b1, w2, b2, w3, b3):
    silu = lambda v: v * jax.nn.sigmoid(v)
    h = silu(x @ w1 + b1)
    h = silu(h @ w2 + b2)
    return h @ w3 + b3


if __name__ == "__main__":
    key = jax.random.PRNGKey(0)
    k_x, k_p = jax.random.split(key)

    B, D = 8, 32            # small synthetic shapes consistent with the module
    L1, L2, OUT = 100, 100, 2

    x = jax.random.normal(k_x, (B, D), dtype=jnp.float32)
    params = init_params(k_p, D, L1, L2, OUT)

    # One-time padding / bf16 cast of the weights (hoisted out of the forward path).
    padded_params, out_classes = prepare_params(*params)

    out = mlp_classifier_forward(x, padded_params, out_classes)
    out = jax.block_until_ready(out)

    ref = reference_forward(x, *params)  # full-f32 reference
    assert out.shape == (B, OUT), out.shape
    # bf16 MXU operands / bf16 output (f32 accumulation) -> loosened tolerance vs f32 ref.
    assert jnp.allclose(out, ref, atol=3e-2, rtol=3e-2), float(jnp.max(jnp.abs(out - ref)))

    print("KERNEL_OK")
</pallas_src>

<mosaic_0001>
module attributes {stable_mosaic.version = 11 : i64} {
  func.func @mlp_kernel(%arg0: i32, %arg1: memref<8x32xf32, #tpu.memory_space<vmem>>, %arg2: memref<32x128xbf16, #tpu.memory_space<vmem>>, %arg3: memref<1x128xf32, #tpu.memory_space<vmem>>, %arg4: memref<128x128xbf16, #tpu.memory_space<vmem>>, %arg5: memref<1x128xf32, #tpu.memory_space<vmem>>, %arg6: memref<128x128xbf16, #tpu.memory_space<vmem>>, %arg7: memref<1x128xf32, #tpu.memory_space<vmem>>, %arg8: memref<8x128xbf16, #tpu.memory_space<vmem>>) attributes {dimension_semantics = [#tpu.dimension_semantics<parallel>], iteration_bounds = array<i64: 1>, scalar_prefetch = 0 : i64, scratch_operands = 0 : i64, tpu.core_type = #tpu.core_type<tc>, window_params = [{transform_indices = @transform_0, window_bounds = array<i64: 8, 32>}, {pipeline_mode = #tpu.pipeline_mode<synchronous>, transform_indices = @transform_1, window_bounds = array<i64: 32, 128>}, {pipeline_mode = #tpu.pipeline_mode<synchronous>, transform_indices = @transform_2, window_bounds = array<i64: 1, 128>}, {pipeline_mode = #tpu.pipeline_mode<synchronous>, transform_indices = @transform_3, window_bounds = array<i64: 128, 128>}, {pipeline_mode = #tpu.pipeline_mode<synchronous>, transform_indices = @transform_4, window_bounds = array<i64: 1, 128>}, {pipeline_mode = #tpu.pipeline_mode<synchronous>, transform_indices = @transform_5, window_bounds = array<i64: 128, 128>}, {pipeline_mode = #tpu.pipeline_mode<synchronous>, transform_indices = @transform_6, window_bounds = array<i64: 1, 128>}, {transform_indices = @transform_7, window_bounds = array<i64: 8, 128>}]} {
    %c0 = arith.constant 0 : index
    %c0_0 = arith.constant 0 : index
    %0 = vector.load %arg1[%c0, %c0_0] : memref<8x32xf32, #tpu.memory_space<vmem>>, vector<8x32xf32>
    %1 = arith.truncf %0 : vector<8x32xf32> to vector<8x32xbf16>
    %c0_1 = arith.constant 0 : index
    %c0_2 = arith.constant 0 : index
    %2 = vector.load %arg2[%c0_1, %c0_2] : memref<32x128xbf16, #tpu.memory_space<vmem>>, vector<32x128xbf16>
    %cst = arith.constant dense<0.000000e+00> : vector<8x128xf32>
    %3 = tpu.matmul %1, %2, %cst {dimension_numbers = #tpu.dot_dimension_numbers<[1], [0], [0], [1], [0, 0, 1, 1], [], []>} : vector<8x32xbf16>, vector<32x128xbf16>, vector<8x128xf32> -> vector<8x128xf32>
    %c0_3 = arith.constant 0 : index
    %c0_4 = arith.constant 0 : index
    %4 = vector.load %arg3[%c0_3, %c0_4] : memref<1x128xf32, #tpu.memory_space<vmem>>, vector<1x128xf32>
    %5 = vector.broadcast %4 : vector<1x128xf32> to vector<8x128xf32>
    %6 = arith.addf %3, %5 : vector<8x128xf32>
    %cst_5 = arith.constant 5.000000e-01 : f32
    %7 = vector.broadcast %cst_5 : f32 to vector<8x128xf32>
    %8 = arith.mulf %7, %6 : vector<8x128xf32>
    %9 = math.tanh %8 : vector<8x128xf32>
    %cst_6 = arith.constant 5.000000e-01 : f32
    %10 = vector.broadcast %cst_6 : f32 to vector<8x128xf32>
    %11 = arith.mulf %10, %9 : vector<8x128xf32>
    %cst_7 = arith.constant 5.000000e-01 : f32
    %12 = vector.broadcast %cst_7 : f32 to vector<8x128xf32>
    %13 = arith.addf %11, %12 : vector<8x128xf32>
    %14 = arith.mulf %6, %13 : vector<8x128xf32>
    %15 = arith.truncf %14 : vector<8x128xf32> to vector<8x128xbf16>
    %c0_8 = arith.constant 0 : index
    %c0_9 = arith.constant 0 : index
    %16 = vector.load %arg4[%c0_8, %c0_9] : memref<128x128xbf16, #tpu.memory_space<vmem>>, vector<128x128xbf16>
    %cst_10 = arith.constant dense<0.000000e+00> : vector<8x128xf32>
    %17 = tpu.matmul %15, %16, %cst_10 {dimension_numbers = #tpu.dot_dimension_numbers<[1], [0], [0], [1], [0, 0, 1, 1], [], []>} : vector<8x128xbf16>, vector<128x128xbf16>, vector<8x128xf32> -> vector<8x128xf32>
    %c0_11 = arith.constant 0 : index
    %c0_12 = arith.constant 0 : index
    %18 = vector.load %arg5[%c0_11, %c0_12] : memref<1x128xf32, #tpu.memory_space<vmem>>, vector<1x128xf32>
    %19 = vector.broadcast %18 : vector<1x128xf32> to vector<8x128xf32>
    %20 = arith.addf %17, %19 : vector<8x128xf32>
    %cst_13 = arith.constant 5.000000e-01 : f32
    %21 = vector.broadcast %cst_13 : f32 to vector<8x128xf32>
    %22 = arith.mulf %21, %20 : vector<8x128xf32>
    %23 = math.tanh %22 : vector<8x128xf32>
    %cst_14 = arith.constant 5.000000e-01 : f32
    %24 = vector.broadcast %cst_14 : f32 to vector<8x128xf32>
    %25 = arith.mulf %24, %23 : vector<8x128xf32>
    %cst_15 = arith.constant 5.000000e-01 : f32
    %26 = vector.broadcast %cst_15 : f32 to vector<8x128xf32>
    %27 = arith.addf %25, %26 : vector<8x128xf32>
    %28 = arith.mulf %20, %27 : vector<8x128xf32>
    %29 = arith.truncf %28 : vector<8x128xf32> to vector<8x128xbf16>
    %c0_16 = arith.constant 0 : index
    %c0_17 = arith.constant 0 : index
    %30 = vector.load %arg6[%c0_16, %c0_17] : memref<128x128xbf16, #tpu.memory_space<vmem>>, vector<128x128xbf16>
    %cst_18 = arith.constant dense<0.000000e+00> : vector<8x128xf32>
    %31 = tpu.matmul %29, %30, %cst_18 {dimension_numbers = #tpu.dot_dimension_numbers<[1], [0], [0], [1], [0, 0, 1, 1], [], []>} : vector<8x128xbf16>, vector<128x128xbf16>, vector<8x128xf32> -> vector<8x128xf32>
    %c0_19 = arith.constant 0 : index
    %c0_20 = arith.constant 0 : index
    %32 = vector.load %arg7[%c0_19, %c0_20] : memref<1x128xf32, #tpu.memory_space<vmem>>, vector<1x128xf32>
    %33 = vector.broadcast %32 : vector<1x128xf32> to vector<8x128xf32>
    %34 = arith.addf %31, %33 : vector<8x128xf32>
    %35 = arith.truncf %34 : vector<8x128xf32> to vector<8x128xbf16>
    %c0_21 = arith.constant 0 : index
    %c0_22 = arith.constant 0 : index
    %36 = vector.load %arg8[%c0_21, %c0_22] : memref<8x128xbf16, #tpu.memory_space<vmem>>, vector<8x128xbf16>
    tpu.vector_store %arg8[%c0_21, %c0_22], %35 {strides = array<i32>} : memref<8x128xbf16, #tpu.memory_space<vmem>>, vector<8x128xbf16>,
    return
  }
  func.func @transform_0(%arg0: i32) -> (i32, i32) {
    %c0_i32 = arith.constant 0 : i32
    %c0_i32_0 = arith.constant 0 : i32
    return %arg0, %c0_i32 : i32, i32
  }
  func.func @transform_1(%arg0: i32) -> (i32, i32) {
    %c0_i32 = arith.constant 0 : i32
    %c0_i32_0 = arith.constant 0 : i32
    %c0_i32_1 = arith.constant 0 : i32
    return %c0_i32, %c0_i32_0 : i32, i32
  }
  func.func @transform_2(%arg0: i32) -> (i32, i32) {
    %c0_i32 = arith.constant 0 : i32
    %c0_i32_0 = arith.constant 0 : i32
    %c0_i32_1 = arith.constant 0 : i32
    return %c0_i32, %c0_i32_0 : i32, i32
  }
  func.func @transform_3(%arg0: i32) -> (i32, i32) {
    %c0_i32 = arith.constant 0 : i32
    %c0_i32_0 = arith.constant 0 : i32
    %c0_i32_1 = arith.constant 0 : i32
    return %c0_i32, %c0_i32_0 : i32, i32
  }
  func.func @transform_4(%arg0: i32) -> (i32, i32) {
    %c0_i32 = arith.constant 0 : i32
    %c0_i32_0 = arith.constant 0 : i32
    %c0_i32_1 = arith.constant 0 : i32
    return %c0_i32, %c0_i32_0 : i32, i32
  }
  func.func @transform_5(%arg0: i32) -> (i32, i32) {
    %c0_i32 = arith.constant 0 : i32
    %c0_i32_0 = arith.constant 0 : i32
    %c0_i32_1 = arith.constant 0 : i32
    return %c0_i32, %c0_i32_0 : i32, i32
  }
  func.func @transform_6(%arg0: i32) -> (i32, i32) {
    %c0_i32 = arith.constant 0 : i32
    %c0_i32_0 = arith.constant 0 : i32
    %c0_i32_1 = arith.constant 0 : i32
    return %c0_i32, %c0_i32_0 : i32, i32
  }
  func.func @transform_7(%arg0: i32) -> (i32, i32) {
    %c0_i32 = arith.constant 0 : i32
    %c0_i32_0 = arith.constant 0 : i32
    return %arg0, %c0_i32 : i32, i32
  }
}

</mosaic_0001>

<bundles_post_ra>
// kernel: tpu_custom_call.1
= control target key start
LH: loop header
LB: loop body
LE: loop exit
PB: predicated region body
PF: predicated region fallthrough
CT: control target
= control target key end

     0   :  { %12 = vsyncpa [#allocation3], 0  ;;  %s627_s0 = inlined_call_operand.hbm [shape: f32[8,32], index: 0, kind: input, shape index: {}]   ;;  %s628_s1 = inlined_call_operand.hbm [shape: bf16[32,128], index: 1, kind: input, shape index: {}]   ;;  %s629_s2 = inlined_call_operand.vmem [shape: f32[1,128], index: 2, kind: input, shape index: {}]   ;;  %s630_s3 = inlined_call_operand.hbm [shape: bf16[128,128], index: 3, kind: input, shape index: {}]   ;;  %s631_s4 = inlined_call_operand.vmem [shape: f32[1,128], index: 4, kind: input, shape index: {}]   ;;  %s632_s5 = inlined_call_operand.hbm [shape: bf16[128,128], index: 5, kind: input, shape index: {}]   ;;  %s633_s6 = inlined_call_operand.vmem [shape: f32[1,128], index: 6, kind: input, shape index: {}]   ;;  %s634_s7 = inlined_call_operand.hbm [shape: bf16[8,128], index: 7, kind: output, shape index: {}]  }
   0x1   :  { %13 = vsyncpa [#allocation6], 0 }
   0x2   :  { %14 = vsyncpa [#allocation9], 0  ;;  %s31_s26 = sshll.u32 %s628_s1, 4  ;;  %s32_s26 = int_to_ptr.hbm [resolvable:$true] %s31_s26 }
   0x3   :  { %15 = vsyncpa [#allocation4], 0  ;;  %s556_s27 = smov [#allocation5]   ;;  %s21_s8 = sshll.u32 %s627_s0, 4  ;;  %s22_s8 = int_to_ptr.hbm [resolvable:$true] %s21_s8 }
   0x4   :  { %s33_s28 = sshll.u32 %s556_s27, 4  ;;  %s557_s9 = smov 64   ;;  %s34_s28 = int_to_ptr.vmem [resolvable:$true] %s33_s28 }
   0x5   :  { %s558_s10 = smov 4   ;;  %s559_s11 = smov [#allocation2]  }
   0x6   :  { %39 = dma.hbm_to_vmem [thread:$0]  %s32_s26, 256, %s34_s28, [#allocation6], %s557_s9, %s557_s9, %s558_s10  }
   0x7   :  { %s23_s12 = sshll.u32 %s559_s11, 4  ;;  %s46_s15 = sshll.u32 %s630_s3, 4  ;;  %s24_s12 = int_to_ptr.vmem [resolvable:$true] %s23_s12  ;;  %s47_s15 = int_to_ptr.hbm [resolvable:$true] %s46_s15 }
   0x8   :  { %26 = dma.hbm_to_vmem [thread:$0]  %s22_s8, 128, %s24_s12, [#allocation3]  }
   0x9   :  { %s61_s17 = sshll.u32 %s632_s5, 4  ;;  %s560_s18 = smov [#allocation7]   ;;  %s62_s17 = int_to_ptr.hbm [resolvable:$true] %s61_s17 }
   0xa   :  { %s48_s19 = sshll.u32 %s560_s18, 4  ;;  %s561_s0 = smov [#allocation8]   ;;  %s49_s19 = int_to_ptr.vmem [resolvable:$true] %s48_s19 }
   0xb   :  { %54 = dma.hbm_to_vmem [thread:$0]  %s47_s15, 1024, %s49_s19, [#allocation6], %s557_s9, %s557_s9, %s558_s10  }
   0xc   :  { %s63_s20 = sshll.u32 %s561_s0, 4  ;;  %s64_s20 = int_to_ptr.vmem [resolvable:$true] %s63_s20 }
   0xd   :  { %69 = dma.hbm_to_vmem [thread:$0]  %s62_s17, 1024, %s64_s20, [#allocation9], %s557_s9, %s557_s9, %s558_s10  }
   0xe   :  { %548 = dma.done.wait [#allocation3], 128  }
   0xf   :  { %549 = vsyncadd [#allocation3], 4294967168 }
  0x10   :  { %550 = dma.done.wait [#allocation6], 1280  }
  0x11   :  { %551 = vsyncadd [#allocation6], 4294966016 }
  0x12   :  { %552 = dma.done.wait [#allocation9], 1024  }
  0x13   :  { %553 = vsyncadd [#allocation9], 4294966272  ;;  %v397_v0 = vld [vmem:[#allocation5 + $0x8] sm:$0xff]  ;;  %v396_v1 = vld [vmem:[#allocation5] sm:$0xff]  ;;  %vm111_vm0 = vcmask 261120   ;;  %s562_s24 = smov [#allocation10]  }
  0x14   :  { %v405_v2 = vld [vmem:[#allocation7 + $0x38] sm:$0xff]  ;;  %121 = vmatpush.bf16.msra.mxu0 %v397_v0  ;;  %v89_v3 = vld [vmem:[#allocation2] sm:$0xff]  ;;  %v404_v4 = vld [vmem:[#allocation7 + $0x30] sm:$0xff]  ;;  %s309_s25 = sshll.u32 %s562_s24, 4  ;;  %s311_s27 = sshll.u32 %s634_s7, 4  ;;  %s310_s25 = int_to_ptr.vmem [resolvable:$true] %s309_s25  ;;  %s312_s27 = int_to_ptr.hbm [resolvable:$true] %s311_s27 }
  0x15   :  { %202 = vmatpush.bf16.msra.mxu1 %v405_v2  ;;  %v90_v5 = vpack.c.bf16 %v89_v3, %v89_v3  ;;  %v403_v6 = vld [vmem:[#allocation7 + $0x28] sm:$0xff]  ;;  %v402_v7 = vld [vmem:[#allocation7 + $0x20] sm:$0xff]  ;;  %v401_v8 = vld [vmem:[#allocation7 + $0x18] sm:$0xff] }
  0x16   :  { %v400_v9 = vld [vmem:[#allocation7 + $0x10] sm:$0xff]  ;;  %v399_v10 = vld [vmem:[#allocation7 + $0x8] sm:$0xff]  ;;  %v398_v11 = vld [vmem:[#allocation7] sm:$0xff] }
  0x17   :  { %v413_v12 = vld [vmem:[#allocation8 + $0x38] sm:$0xff]  ;;  %v412_v13 = vld [vmem:[#allocation8 + $0x30] sm:$0xff]  ;;  %v411_v14 = vld [vmem:[#allocation8 + $0x28] sm:$0xff] }
  0x18   :  { %122 = vmatpush.bf16.msra.mxu0 %v396_v1  ;;  %289 = vmatpush.bf16.msra.mxu2 %v413_v12  ;;  %v421_v15 = vld [vmem:[%s629_s2] ss:$0 sm:$0xff]  ;;  %v410_v25 = vld [vmem:[#allocation8 + $0x20] sm:$0xff]  ;;  %v409_v26 = vld [vmem:[#allocation8 + $0x18] sm:$0xff] }
  0x19   :  { %203 = vmatpush.bf16.msra.mxu1 %v404_v4  ;;  %v408_v27 = vld [vmem:[#allocation8 + $0x10] sm:$0xff]  ;;  %v407_v28 = vld [vmem:[#allocation8 + $0x8] sm:$0xff]  ;;  %v406_v29 = vld [vmem:[#allocation8] sm:$0xff] }
  0x1a   :  { %v422_v30 = vld [vmem:[%s631_s4] ss:$0 sm:$0xff] }
  0x1b   :  { %331 = vmatmul.msk.bf16.vlgmr.msra.gmra.mxu0 %vm111_vm0, %v90_v5  ;;  %v423_v40 = vld [vmem:[%s633_s6] ss:$0 sm:$0xff] }
  0x1c   :  { %290 = vmatpush.bf16.msra.mxu2 %v412_v13 }
  0x1d   :  { %204 = vmatpush.bf16.msra.mxu1 %v403_v6 }
  0x20   :  { %291 = vmatpush.bf16.msra.mxu2 %v411_v14 }
  0x21   :  { %205 = vmatpush.bf16.msra.mxu1 %v402_v7 }
  0x24   :  { %292 = vmatpush.bf16.msra.mxu2 %v410_v25 }
  0x25   :  { %206 = vmatpush.bf16.msra.mxu1 %v401_v8 }
  0x28   :  { %293 = vmatpush.bf16.msra.mxu2 %v409_v26 }
  0x29   :  { %207 = vmatpush.bf16.msra.mxu1 %v400_v9 }
  0x2c   :  { %294 = vmatpush.bf16.msra.mxu2 %v408_v27 }
  0x2d   :  { %208 = vmatpush.bf16.msra.mxu1 %v399_v10 }
  0x30   :  { %295 = vmatpush.bf16.msra.mxu2 %v407_v28 }
  0x31   :  { %209 = vmatpush.bf16.msra.mxu1 %v398_v11 }
  0x34   :  { %296 = vmatpush.bf16.msra.mxu2 %v406_v29 }
  0x98   :  { %v124_v16 = vpop.f32.mrf.mxu0 }
  0x99   :  { %v125_v17 = vadd.f32 %v421_v15, %v124_v16 }
  0x9b   :  { %v128_v18 = vmul.f32 0.5, %v125_v17 }
  0x9d   :  { %424 = vtanh.f32 %v128_v18 }
  0xa0   :  { %v126_v19 = vpop.f32.mrf.mxu0 }
  0xa3   :  { %v425_v20 = vpop.eup %424 }
  0xa4   :  { %v130_v21 = vmul.f32 0.5, %v425_v20 }
  0xa6   :  { %v131_v22 = vadd.f32 0.5, %v130_v21 }
  0xa8   :  { %v132_v23 = vmul.f32 %v131_v22, %v125_v17 }
  0xaa   :  { %v133_v24 = vpack.c.bf16 %v132_v23, %v132_v23 }
  0xac   :  { %210 = vmatmul.bf16.vlgmr.msra.gmra.mxu1 %v133_v24 }
 0x129   :  { %v211_v31 = vpop.f32.mrf.mxu1 }
 0x12a   :  { %v212_v32 = vadd.f32 %v422_v30, %v211_v31 }
 0x12c   :  { %v215_v33 = vmul.f32 0.5, %v212_v32 }
 0x12e   :  { %426 = vtanh.f32 %v215_v33 }
 0x131   :  { %v213_v34 = vpop.f32.mrf.mxu1 }
 0x134   :  { %v427_v35 = vpop.eup %426 }
 0x135   :  { %v217_v36 = vmul.f32 0.5, %v427_v35 }
 0x137   :  { %v218_v37 = vadd.f32 0.5, %v217_v36 }
 0x139   :  { %v219_v38 = vmul.f32 %v218_v37, %v212_v32 }
 0x13b   :  { %v220_v39 = vpack.c.bf16 %v219_v38, %v219_v38 }
 0x13d   :  { %297 = vmatmul.bf16.vlgmr.msra.gmra.mxu2 %v220_v39 }
 0x1c0   :  { %v298_v41 = vpop.f32.mrf.mxu2 }
 0x1c1   :  { %v299_v42 = vadd.f32 %v423_v40, %v298_v41 }
 0x1c3   :  { %v302_v43 = vpack.c.bf16 %v299_v42, %v299_v42 }
 0x1c5   :  { %303 = vst [vmem:[#allocation10] sm:$0xf] %v302_v43 }
 0x1c6   :  { %314 = dma.vmem_to_hbm [thread:$0]  %s310_s25, 64, %s312_s27, [#allocation4]  }
 0x1c8   :  { %v300_v44 = vpop.f32.mrf.mxu2 }
 0x1c9   :  { %554 = dma.done.wait [#allocation4], 64  }
 0x1ca   :  { %555 = vsyncadd [#allocation4], 4294967232 }
 0x1cb   :  { %319 = vsyncpa [#allocation3], 1 }
 0x1cc   :  { %320 = vsyncpa [#allocation6], 1 }
 0x1cd   :  { %321 = vsyncpa [#allocation9], 1 }
 0x1ce   :  { %322 = vsyncpa [#allocation4], 1 }

</bundles_post_ra>
